<compile_context>
chip_gen: v6e
topology: v6e:2x2x1
jax: 0.10.0
libtpu: 0.0.40
codegen_flags: <defaults>
</compile_context>

<pallas_src>
import math

import jax
import jax.numpy as jnp
from jax.experimental import pallas as pl
from jax.experimental.pallas import tpu as pltpu

# Module defaults (ZernikeBases.__init__)
FNA = 0.8 / 0.55
N_IMMERSION = 1.33
WAVELENGTH = 0.55

LANE = 512          # lane width for the flattened fallback path (multiple of 128)
MIN_ROW_TILE = 16   # bf16 sublane packing: one vreg holds (16, 128) bf16
MIN_STEPS = 4       # aim for >= 4 row-tiles (>= 2 per TensorCore on v7x)


def _round_up(x, m):
    return ((x + m - 1) // m) * m


def _vmem_budget():
    """Generation-aware (tile_budget_bytes, vmem_limit_bytes)."""
    try:
        info = pltpu.get_tpu_info()
        cap = int(getattr(info, "vmem_capacity_bytes", 0) or 0)
    except Exception:
        cap = 0
    if cap >= (128 << 20):                 # v5e / v6e: 128 MiB physical VMEM
        return 80 << 20, 100 << 20
    return 24 << 20, 48 << 20              # v7x (64 MiB) or unknown: conservative


# ----------------------------------------------------------------------------
# Kernel: out_tile (f32, resident across the j axis) accumulates
#         sum_jj coefficients[j*j_tile + jj] * bf16_basis_tile[jj]
# ----------------------------------------------------------------------------
def _zernike_kernel(coef_ref, bases_ref, out_ref):
    """coef_ref : SMEM f32[J_pad]
       bases_ref: VMEM bf16[j_tile, tile_rows, lane]  (mask pre-folded at init)
       out_ref  : VMEM f32[tile_rows, lane]           (accumulator across j axis)
    """
    j = pl.program_id(1)
    j_tile = bases_ref.shape[0]

    @pl.when(j == 0)
    def _():
        out_ref[...] = jnp.zeros_like(out_ref)

    acc = out_ref[...]
    for jj in range(j_tile):                       # static unroll; j_tile is small
        c = coef_ref[j * j_tile + jj]
        acc = acc + c * bases_ref[jj].astype(jnp.float32)
    out_ref[...] = acc


# ----------------------------------------------------------------------------
# Init-time planning (all padding / layout work happens ONCE here)
# ----------------------------------------------------------------------------
def _plan_tiles(rows, lane, num_bases, budget, native):
    in_itemsize = 2  # bf16 slab

    # -- large-J guard: how many bases can be resident per step --
    def footprint(jt, tr):
        # double-buffered bf16 input stream + resident f32 accumulator/output tile
        return 2 * jt * tr * lane * in_itemsize + 2 * tr * lane * 4

    j_tile = num_bases
    while j_tile > 1 and footprint(j_tile, MIN_ROW_TILE) > budget:
        j_tile -= 1

    # -- row tile: as big as the budget allows, but keep >= MIN_STEPS grid steps --
    per_row = 2 * j_tile * lane * in_itemsize + 2 * lane * 4
    max_rows = max(MIN_ROW_TILE, (budget // per_row) // MIN_ROW_TILE * MIN_ROW_TILE)
    if rows >= MIN_STEPS * MIN_ROW_TILE:
        target = max(MIN_ROW_TILE, (rows // MIN_STEPS) // MIN_ROW_TILE * MIN_ROW_TILE)
    else:
        target = _round_up(rows, MIN_ROW_TILE)
    tile_rows = max(MIN_ROW_TILE, min(max_rows, target))

    if native:
        # native (H, W) path: tile_rows must divide H exactly (no output un-pad)
        best, d = MIN_ROW_TILE, MIN_ROW_TILE
        while d <= min(rows, tile_rows):
            if rows % d == 0:
                best = d
            d += MIN_ROW_TILE
        tile_rows = best
        padded_rows = rows
    else:
        padded_rows = _round_up(rows, tile_rows)
    return j_tile, tile_rows, padded_rows


def _build_plan(masked_bases):
    """Build the kernel-ready bf16 slab + tiling plan (runs once, at init)."""
    num_bases, H, W = masked_bases.shape
    budget, vmem_limit = _vmem_budget()

    native = (W % 128 == 0) and (H % MIN_ROW_TILE == 0)
    if native:
        lane, rows = W, H
        j_tile, tile_rows, padded_rows = _plan_tiles(rows, lane, num_bases, budget, True)
        slab = masked_bases.astype(jnp.bfloat16)                       # (J, H, W)
    else:
        lane = LANE
        total = H * W
        padded_total = _round_up(total, lane)
        flat = masked_bases.reshape(num_bases, total)
        if padded_total != total:
            flat = jnp.pad(flat, ((0, 0), (0, padded_total - total)))
        rows = padded_total // lane
        j_tile, tile_rows, padded_rows = _plan_tiles(rows, lane, num_bases, budget, False)
        if padded_rows != rows:
            flat = jnp.pad(flat, ((0, 0), (0, (padded_rows - rows) * lane)))
        slab = flat.reshape(num_bases, padded_rows, lane).astype(jnp.bfloat16)

    j_pad = _round_up(num_bases, j_tile)
    if j_pad != num_bases:
        slab = jnp.pad(slab, ((0, j_pad - num_bases), (0, 0), (0, 0)))

    return dict(slab=slab, J=num_bases, J_pad=j_pad, j_tile=j_tile,
                tile_rows=tile_rows, padded_rows=padded_rows, lane=lane,
                native=native, H=H, W=W, total=H * W, vmem_limit=vmem_limit)


# ----------------------------------------------------------------------------
# forward(): P = (sum_j c_j * basis_j) * mask   (mask pre-folded into the slab)
# ----------------------------------------------------------------------------
def zernike_forward(coefficients, plan):
    coefficients = coefficients.astype(jnp.float32)
    if plan["J_pad"] != plan["J"]:
        coefficients = jnp.pad(coefficients, (0, plan["J_pad"] - plan["J"]))

    j_tile, tile_rows = plan["j_tile"], plan["tile_rows"]
    padded_rows, lane = plan["padded_rows"], plan["lane"]
    grid = (padded_rows // tile_rows, plan["J_pad"] // j_tile)

    out = pl.pallas_call(
        _zernike_kernel,
        out_shape=jax.ShapeDtypeStruct((padded_rows, lane), jnp.float32),
        grid=grid,
        in_specs=[
            pl.BlockSpec(memory_space=pltpu.SMEM),                           # coefficients
            pl.BlockSpec((j_tile, tile_rows, lane), lambda i, j: (j, i, 0)),  # bf16 bases
        ],
        out_specs=pl.BlockSpec((tile_rows, lane), lambda i, j: (i, 0)),
        compiler_params=pltpu.CompilerParams(
            dimension_semantics=("parallel", "arbitrary"),
            vmem_limit_bytes=plan["vmem_limit"],
        ),
    )(coefficients, plan["slab"])

    if plan["native"]:
        return out                                  # already exactly (H, W)
    # TODO(synk): non-lane-aligned grids still pay one un-pad copy per call;
    # fold this slice into the consumer if that path ever becomes hot.
    return out.reshape(-1)[:plan["total"]].reshape(plan["H"], plan["W"])


# ----------------------------------------------------------------------------
# __init__-equivalent buffer construction (plain JAX glue, computed once)
# ----------------------------------------------------------------------------
def _radial_polynomial(n, m, rho):
    # Standard Zernike radial polynomial R_n^m (n >= m, (n - m) even).
    # TODO(synk): the reference radial_polynomial is not runnable as written
    # (float range(), `-1 ** k` precedence, missing k=(n-m)/2 term); this uses
    # the standard closed form its binomial product is algebraically equal to.
    R = jnp.zeros_like(rho)
    for k in range((n - m) // 2 + 1):
        c = ((-1.0) ** k) * math.comb(n - k, k) * math.comb(n - 2 * k, (n - m) // 2 - k)
        R = R + c * (rho ** (n - 2 * k))
    return R


def zernike_init(kx, ky, fNA=FNA, num_coefficients=1):
    kxn = (kx / fNA).astype(jnp.float32)
    kyn = (ky / fNA).astype(jnp.float32)
    rho = jnp.sqrt(kxn * kxn + kyn * kyn)          # cart2pol radius
    theta = jnp.arctan2(kyn, kxn)                  # cart2pol angle
    mask = (kxn * kxn + kyn * kyn <= 1.0).astype(jnp.float32)

    # TODO(synk): the reference keeps appending bases past num_coefficients
    # (inner-loop break only), which would index coefficients out of range in
    # forward(); we stop at exactly num_coefficients bases (the evident intent).
    bases = []
    pairs = [(n, m)
             for n in range(num_coefficients)
             for m in range(num_coefficients)
             if n >= m and (n - m) % 2 == 0]
    for n, m in pairs:
        if len(bases) >= num_coefficients:
            break
        R = _radial_polynomial(n, m, rho)
        for sinusoid in (jnp.cos, jnp.sin):
            bases.append(R * sinusoid(m * theta))
            if len(bases) >= num_coefficients:
                break
    bases = jnp.stack(bases, axis=0).astype(jnp.float32)      # (J, H, W)

    # Fold the binary {0,1} mask into the static buffers once (bit-identical to
    # masking after the sum; one fewer HBM stream per forward call), then build
    # the kernel-ready bf16 slab + tiling plan once.
    masked_bases = bases * mask[None, :, :]
    plan = _build_plan(masked_bases)
    return bases, mask, plan


def zernike_reference(coefficients, bases, mask):
    """Pure-JAX f32 reference mirroring the PyTorch forward exactly."""
    P = jnp.zeros_like(bases[0])
    for j in range(bases.shape[0]):
        P = P + coefficients[j] * bases[j]
    return P * mask


if __name__ == "__main__":
    # Deterministic example: 64x128 spatial-frequency grid (lane-dense W, so the
    # native-output path is exercised), num_coefficients = 4 Zernike bases.
    H, W = 64, 128
    J = 4
    key = jax.random.PRNGKey(0)
    kkx, kky, kc = jax.random.split(key, 3)
    kx = jax.random.uniform(kkx, (H, W), jnp.float32, minval=-FNA, maxval=FNA)
    ky = jax.random.uniform(kky, (H, W), jnp.float32, minval=-FNA, maxval=FNA)
    coefficients = jax.random.uniform(kc, (J,), jnp.float32)   # ~ torch.rand(J)

    # __init__-time buffers + kernel plan (computed once, reused every forward).
    bases, mask, plan = zernike_init(kx, ky, num_coefficients=J)

    out = zernike_forward(coefficients, plan)
    out = jax.block_until_ready(out)

    ref = zernike_reference(coefficients, bases, mask)
    assert out.shape == (H, W) and out.dtype == jnp.float32
    # bf16 basis storage: loosened tolerance vs the f32 reference.
    assert jnp.allclose(out, ref, atol=2e-2, rtol=2e-2), "mismatch vs reference"

    print("KERNEL_OK")
</pallas_src>

<mosaic_0001>
module attributes {stable_mosaic.version = 11 : i64} {
  func.func @_zernike_kernel(%arg0: i32, %arg1: i32, %arg2: memref<4xf32, #tpu.memory_space<smem>>, %arg3: memref<4x16x128xbf16, #tpu.memory_space<vmem>>, %arg4: memref<16x128xf32, #tpu.memory_space<vmem>>) attributes {dimension_semantics = [#tpu.dimension_semantics<parallel>, #tpu.dimension_semantics<arbitrary>], iteration_bounds = array<i64: 4, 1>, scalar_prefetch = 0 : i64, scratch_operands = 0 : i64, tpu.core_type = #tpu.core_type<tc>, window_params = [{transform_indices = @transform_0, window_bounds = array<i64: 4>}, {transform_indices = @transform_1, window_bounds = array<i64: 4, 16, 128>}, {transform_indices = @transform_2, window_bounds = array<i64: 16, 128>}]} {
    %c0_i32 = arith.constant 0 : i32
    %0 = arith.cmpi eq, %arg1, %c0_i32 : i32
    %1 = arith.extui %0 : i1 to i32
    %c0_i32_0 = arith.constant 0 : i32
    %2 = arith.cmpi ne, %1, %c0_i32_0 : i32
    scf.if %2 {
      %cst = arith.constant 0.000000e+00 : f32
      %45 = vector.broadcast %cst : f32 to vector<16x128xf32>
      %c0_17 = arith.constant 0 : index
      %c0_18 = arith.constant 0 : index
      %46 = vector.load %arg4[%c0_17, %c0_18] : memref<16x128xf32, #tpu.memory_space<vmem>>, vector<16x128xf32>
      tpu.vector_store %arg4[%c0_17, %c0_18], %45 {strides = array<i32>} : memref<16x128xf32, #tpu.memory_space<vmem>>, vector<16x128xf32>,
    } else {
    }
    %c0 = arith.constant 0 : index
    %c0_1 = arith.constant 0 : index
    %3 = vector.load %arg4[%c0, %c0_1] : memref<16x128xf32, #tpu.memory_space<vmem>>, vector<16x128xf32>
    %c4_i32 = arith.constant 4 : i32
    %4 = arith.muli %arg1, %c4_i32 : i32
    %c0_i32_2 = arith.constant 0 : i32
    %5 = arith.addi %4, %c0_i32_2 : i32
    %6 = arith.index_cast %5 : i32 to index
    %7 = memref.load %arg2[%6] : memref<4xf32, #tpu.memory_space<smem>>
    %c0_3 = arith.constant 0 : index
    %c0_4 = arith.constant 0 : index
    %c0_5 = arith.constant 0 : index
    %8 = vector.load %arg3[%c0_3, %c0_4, %c0_5] : memref<4x16x128xbf16, #tpu.memory_space<vmem>>, vector<1x16x128xbf16>
    %9 = vector.shape_cast %8 : vector<1x16x128xbf16> to vector<16x128xbf16>
    %10 = arith.extf %9 : vector<16x128xbf16> to vector<16x128xf32>
    %11 = vector.broadcast %7 : f32 to vector<16x128xf32>
    %12 = arith.mulf %11, %10 : vector<16x128xf32>
    %13 = arith.addf %3, %12 : vector<16x128xf32>
    %c4_i32_6 = arith.constant 4 : i32
    %14 = arith.muli %arg1, %c4_i32_6 : i32
    %c1_i32 = arith.constant 1 : i32
    %15 = arith.addi %14, %c1_i32 : i32
    %16 = arith.index_cast %15 : i32 to index
    %17 = memref.load %arg2[%16] : memref<4xf32, #tpu.memory_space<smem>>
    %c1 = arith.constant 1 : index
    %c0_7 = arith.constant 0 : index
    %c0_8 = arith.constant 0 : index
    %18 = vector.load %arg3[%c1, %c0_7, %c0_8] : memref<4x16x128xbf16, #tpu.memory_space<vmem>>, vector<1x16x128xbf16>
    %19 = vector.shape_cast %18 : vector<1x16x128xbf16> to vector<16x128xbf16>
    %20 = arith.extf %19 : vector<16x128xbf16> to vector<16x128xf32>
    %21 = vector.broadcast %17 : f32 to vector<16x128xf32>
    %22 = arith.mulf %21, %20 : vector<16x128xf32>
    %23 = arith.addf %13, %22 : vector<16x128xf32>
    %c4_i32_9 = arith.constant 4 : i32
    %24 = arith.muli %arg1, %c4_i32_9 : i32
    %c2_i32 = arith.constant 2 : i32
    %25 = arith.addi %24, %c2_i32 : i32
    %26 = arith.index_cast %25 : i32 to index
    %27 = memref.load %arg2[%26] : memref<4xf32, #tpu.memory_space<smem>>
    %c2 = arith.constant 2 : index
    %c0_10 = arith.constant 0 : index
    %c0_11 = arith.constant 0 : index
    %28 = vector.load %arg3[%c2, %c0_10, %c0_11] : memref<4x16x128xbf16, #tpu.memory_space<vmem>>, vector<1x16x128xbf16>
    %29 = vector.shape_cast %28 : vector<1x16x128xbf16> to vector<16x128xbf16>
    %30 = arith.extf %29 : vector<16x128xbf16> to vector<16x128xf32>
    %31 = vector.broadcast %27 : f32 to vector<16x128xf32>
    %32 = arith.mulf %31, %30 : vector<16x128xf32>
    %33 = arith.addf %23, %32 : vector<16x128xf32>
    %c4_i32_12 = arith.constant 4 : i32
    %34 = arith.muli %arg1, %c4_i32_12 : i32
    %c3_i32 = arith.constant 3 : i32
    %35 = arith.addi %34, %c3_i32 : i32
    %36 = arith.index_cast %35 : i32 to index
    %37 = memref.load %arg2[%36] : memref<4xf32, #tpu.memory_space<smem>>
    %c3 = arith.constant 3 : index
    %c0_13 = arith.constant 0 : index
    %c0_14 = arith.constant 0 : index
    %38 = vector.load %arg3[%c3, %c0_13, %c0_14] : memref<4x16x128xbf16, #tpu.memory_space<vmem>>, vector<1x16x128xbf16>
    %39 = vector.shape_cast %38 : vector<1x16x128xbf16> to vector<16x128xbf16>
    %40 = arith.extf %39 : vector<16x128xbf16> to vector<16x128xf32>
    %41 = vector.broadcast %37 : f32 to vector<16x128xf32>
    %42 = arith.mulf %41, %40 : vector<16x128xf32>
    %43 = arith.addf %33, %42 : vector<16x128xf32>
    %c0_15 = arith.constant 0 : index
    %c0_16 = arith.constant 0 : index
    %44 = vector.load %arg4[%c0_15, %c0_16] : memref<16x128xf32, #tpu.memory_space<vmem>>, vector<16x128xf32>
    tpu.vector_store %arg4[%c0_15, %c0_16], %43 {strides = array<i32>} : memref<16x128xf32, #tpu.memory_space<vmem>>, vector<16x128xf32>,
    return
  }
  func.func @transform_0(%arg0: i32, %arg1: i32) -> i32 {
    %c0_i32 = arith.constant 0 : i32
    %c0_i32_0 = arith.constant 0 : i32
    return %c0_i32 : i32
  }
  func.func @transform_1(%arg0: i32, %arg1: i32) -> (i32, i32, i32) {
    %c0_i32 = arith.constant 0 : i32
    %c0_i32_0 = arith.constant 0 : i32
    return %arg1, %arg0, %c0_i32 : i32, i32, i32
  }
  func.func @transform_2(%arg0: i32, %arg1: i32) -> (i32, i32) {
    %c0_i32 = arith.constant 0 : i32
    %c0_i32_0 = arith.constant 0 : i32
    return %arg0, %c0_i32 : i32, i32
  }
}

</mosaic_0001>

<bundles_post_ra>
// kernel: tpu_custom_call.1
= control target key start
LH: loop header
LB: loop body
LE: loop exit
PB: predicated region body
PF: predicated region fallthrough
CT: control target
= control target key end

     0   :  { %7 = vsyncpa [#allocation5], 0  ;;  %s813_s0 = inlined_call_operand.hbm [shape: f32[4], index: 0, kind: input, shape index: {}]   ;;  %s814_s1 = inlined_call_operand.hbm [shape: bf16[4,64,128], index: 1, kind: input, shape index: {}]   ;;  %s815_s2 = inlined_call_operand.hbm [shape: f32[64,128], index: 2, kind: output, shape index: {}]  }
   0x1   :  { %8 = vsyncpa [#allocation3], 0 }
   0x2   :  { %10 = vsyncpa [#allocation3 + $0x1], 0 }
   0x3   :  { %11 = vsyncpa [#allocation4], 0 }
   0x4   :  { %13 = vsyncpa [#allocation4 + $0x1], 0  ;;  %s641_s9 = smov 0   ;;  %s643_s10 = smov 0  }
   0x5   :  { %s645_s11 = smov 0   ;;  %s647_s12 = smov 0  }
   0x6   :  { %s649_s13 = smov 0   ;;  %s651_s14 = smov 0  }
   0x7 LB: > { %s386_s15 = sadd.s32 4294967295, %s614_s14   ;;  %s387_s16 = sadd.s32 4294967294, %s614_s14   ;;  %s614_s14 = sphi %s651_s14, %s19_s14   ;;  %s610_s13 = sphi %s649_s13, %s826_s13   ;;  %s606_s12 = sphi %s647_s12, %s825_s12   ;;  %s602_s11 = sphi %s645_s11, %s824_s11   ;;  %s598_s10 = sphi %s643_s10, %s823_s10   ;;  %s594_s9 = sphi %s641_s9, %s822_s9  }
   0x8   : > { %s31_s17 = sadd.s32 1, %s610_s13  ;;  %s61_s18 = sadd.s32 1, %s602_s11 }
   0x9   : > { %p33_p0 = scmp.ge.s32.totalorder %s31_s17, 4  ;;  %p68_p1 = scmp.ne.s32.totalorder %s602_s11, %s598_s10 }
   0xa   : > { %p69_p2 = scmp.eq.s32.totalorder %s614_s14, 0  ;;  %p74_p3 = scmp.ne.s32.totalorder %s598_s10, %s594_s9 }
   0xb   : > { %s828_s17 = smov (%p33_p0, %s31_s17), 0  ;;  %p686_p5 = scmp.eq.s32.totalorder %s386_s15, 0 }
   0xc   : > { %p682_p4 = por %p69_p2, %p68_p1  ;;  %s57_s21 = ssub.s32 %s610_s13, %s828_s17 }
   0xd   : > { %p98_p6 = scmp.eq.s32.totalorder %s386_s15, 3  ;;  %p59_p7 = scmp.eq.s32.totalorder %s57_s21, 0 }
   0xe   : > { %p694_p8 = por %p686_p5, %p74_p3  ;;  %p104_p10 = scmp.eq.s32.totalorder %s387_s16, 3 }
   0xf   : > { %p698_p9 = por %p98_p6, %p68_p1  ;;  %p388_p12 = scmp.ge.s32.totalorder %s614_s14, 1 }
  0x10   : > { %s703_s24 = scalar_select %p59_p7, %s602_s11, %s61_s18  }
  0x11   : > { %p705_p11 = por %p104_p10, %p74_p3  ;;  %p111_p13 = scmp.lt.s32.totalorder %s614_s14, 5 }
  0x12   : > { %s616_s27 = smov [#allocation2]   ;;  %p390_p3 = scmp.ge.s32.totalorder %s614_s14, 4 }
  0x13   : > { %p711_p0 = pnand %p388_p12, %p111_p13 }
  0x15   : > { %p450_p2 = pneg %p711_p0  ;;  %129 = sbr.rel (%p390_p3) target bundleno = 39 (0x27), region = 20 }
  0x17   : > { %p451_p1 = pnand %p450_p2, %p686_p5 }
  0x19   : > { %453 = dma.hbm_to_smem (!%p451_p1), %s813_s0, 16, %s616_s27, [#allocation5]  }
  0x1a   : > { %s133_s30 = sand.u32 1, %s602_s11   ;;  %s414_s3 = sshll.u32 %s610_s13, 7 }
  0x1b   : > { %s391_s4 = sshll.u32 %s133_s30, 5  ;;  %s146_s7 = scalar_lea.hbm %s814_s1, %s414_s3 }
  0x1c   : > { %s437_s8 = scalar_select %p682_p4, [#allocation0], [#allocation10] }
  0x1d   : > { %s137_s15 = scalar_lea.vmem [#allocation6], %s391_s4  ;;  %s617_s21 = smov 512  }
  0x1e   : > { %s159_s16 = sshll.u32 %s137_s15, 4  ;;  %s151_s18 = sld [smem:[%s437_s8]]   ;;  %s160_s16 = int_to_ptr.vmem [resolvable:$true] %s159_s16 }
  0x1f   : > { %438 = sst [smem:[#allocation9]] (%p682_p4), %s617_s21  ;;  %s618_s27 = smov 128  }
  0x20   : > { %439 = sst [smem:[#allocation9 + $0x1]] (%p682_p4), %s618_s27  ;;  %s619_s28 = smov 2  }
  0x21   : > { %440 = sst [smem:[#allocation9 + $0x2]] (%p682_p4), %s619_s28  ;;  %s620_s29 = smov 64  }
  0x22   : > { %441 = sst [smem:[#allocation9 + $0x3]] (%p682_p4), %s620_s29  ;;  %s621_s4 = smov 4  }
  0x23   : > { %442 = sst [smem:[#allocation9 + $0x4]] (%p682_p4), %s620_s29  ;;  %s134_s6 = scalar_lea.sflag [#allocation3], %s133_s30 }
  0x24   : > { %s394_s3 = sshll.u32 %s151_s18, 26  ;;  %443 = sst [smem:[#allocation9 + $0x5]] (%p682_p4), %s621_s4 }
  0x25   : > { %s395_s5 = sadd.s32 134217728, %s394_s3  ;;  %s622_s8 = smov 131072  }
  0x26   : > { %444 = dma.general (%p682_p4), %s146_s7, 512, %s160_s16, %s134_s6, %s622_s8, [#allocation9], %s395_s5, 0  }
  0x27 PF: > { %184 = sbr.rel (%p711_p0) target bundleno = 81 (0x51), region = 28 }
  0x2c   : > { %581 = dma.done.wait (%p686_p5), [#allocation5], 16  }
  0x2d   : > { %583 = vsyncadd (%p686_p5), [#allocation5], 4294967280  ;;  %s751_s15 = sand.u32 1, %s598_s10  }
  0x2e   : > { %s398_s30 = sshll.u32 %s751_s15, 5  ;;  %s191_s18 = scalar_lea.sflag [#allocation3], %s751_s15 }
  0x2f   : > { %s194_s19 = scalar_lea.vmem [#allocation6], %s398_s30 }
  0x30   : > { %585 = dma.done.wait (%p694_p8), %s191_s18, 512  }
  0x31   : > { %587 = vsyncadd (%p694_p8), %s191_s18, 4294966784 }
  0x32   : > { %199 = sfence }
  0x33   : > { %s228_s26 = sld [smem:[#allocation2]]  ;;  %v417_v0 = vld [vmem:[%s194_s19] sm:$0xff]   ;;  %v432_v1 = vld [vmem:[%s194_s19 + $0x8] sm:$0xff]   ;;  %v433_v2 = vld [vmem:[%s194_s19 + $0x10] sm:$0xff]   ;;  %s399_s21 = sshll.u32 %s751_s15, 4 }
  0x34   : > { %s400_s20 = sld [smem:[#allocation2 + $0x1]]  ;;  %v418_v3 = vunpack.c.l.bf16 %v417_v0  ;;  %v434_v4 = vld [vmem:[%s194_s19 + $0x18] sm:$0xff]   ;;  %v419_v5 = vunpack.c.h.bf16 %v417_v0  ;;  %v422_v6 = vunpack.c.l.bf16 %v432_v1  ;;  %v423_v7 = vunpack.c.h.bf16 %v432_v1  ;;  %s415_s22 = sshll.u32 %s606_s12, 8 }
  0x35   : > { %s403_s7 = sld [smem:[#allocation2 + $0x2]]  ;;  %v426_v8 = vunpack.c.l.bf16 %v433_v2  ;;  %v430_v10 = vunpack.c.l.bf16 %v434_v4  ;;  %v427_v11 = vunpack.c.h.bf16 %v433_v2  ;;  %v431_v15 = vunpack.c.h.bf16 %v434_v4  ;;  %s215_s27 = scalar_lea.vmem [#allocation7], %s399_s21 }
  0x36   : > { %s406_s16 = sld [smem:[#allocation2 + $0x3]]  ;;  %s290_s28 = sshll.u32 %s215_s27, 4  ;;  %s766_s28 = int_to_ptr.vmem [resolvable:$true] %s290_s28 }
  0x37   : > { %s764_s4 = scalar_lea.hbm %s815_s2, %s415_s22  ;;  %s277_s5 = scalar_lea.sflag [#allocation4], %s751_s15 }
  0x38   : > { %s530_s12 = scalar_lea.vmem %s766_s28, 256  ;;  %s623_s6 = smov [#allocation7]  }
  0x39   : > { %v233_v9 = vstv %s228_s26  ;;  %p531_p4 = scmp.ne.s32.totalorder %s766_s28, %s530_s12  ;;  %s534_s8 = sshll.u32 %s623_s6, 4  ;;  %s535_s8 = int_to_ptr.vmem [resolvable:$false] %s534_s8 }
  0x3a   : > { %v234_v12 = vmul.f32 %v418_v3, %v233_v9  ;;  %v245_v13 = vstv %s400_s20  ;;  %v235_v14 = vmul.f32 %v419_v5, %v233_v9  ;;  %s536_s30 = scalar_lea.vmem %s535_s8, 512  ;;  %p537_p7 = scmp.lt.s32.totalorder %s766_s28, %s535_s8 }
  0x3b   : > { %v246_v16 = vmul.f32 %v422_v6, %v245_v13  ;;  %v257_v17 = vstv %s403_s7  ;;  %v247_v18 = vmul.f32 %v423_v7, %v245_v13  ;;  %p532_p5 = pnand %p531_p4, %p698_p9  ;;  %p538_p8 = scmp.lt.s32.totalorder %s536_s30, %s530_s12 }
  0x3c   : > { %v258_v19 = vmul.f32 %v426_v8, %v257_v17  ;;  %v269_v20 = vstv %s406_s16  ;;  %v259_v21 = vmul.f32 %v427_v11, %v257_v17 }
  0x3d   : > { %v248_v22 = vadd.f32 %v246_v16, %v234_v12  ;;  %v270_v23 = vmul.f32 %v430_v10, %v269_v20  ;;  %v249_v24 = vadd.f32 %v247_v18, %v235_v14  ;;  %v271_v25 = vmul.f32 %v431_v15, %v269_v20  ;;  %p533_p6 = pneg %p532_p5  ;;  %p539_p10 = por %p538_p8, %p537_p7 }
  0x3f   : > { %v260_v26 = vadd.f32 %v258_v19, %v248_v22  ;;  %v261_v27 = vadd.f32 %v259_v21, %v249_v24  ;;  %p540_p12 = pnand %p539_p10, %p533_p6 }
  0x41   : > { %v272_v28 = vadd.f32 %v270_v23, %v260_v26  ;;  %v273_v29 = vadd.f32 %v271_v25, %v261_v27 }
  0x43   : > { %274 = vst [vmem:[%s215_s27] sm:$0xff] %v272_v28  ;;  %275 = vst [vmem:[%s215_s27 + $0x8] sm:$0xff] %v273_v29 }
  0x44   : > { %543 = shalt.err (!%p540_p12)
}
  0x45   : > { %s544_s18 = scalar_lea.hbm %s764_s4, 256  ;;  %s548_s20 = scalar_lea.hbm %s815_s2, 1024 }
  0x46   : > { %p545_p13 = scmp.ne.s32.totalorder %s764_s4, %s544_s18  ;;  %p549_p1 = scmp.lt.s32.totalorder %s764_s4, %s815_s2 }
  0x47   : > { %p550_p3 = scmp.lt.s32.totalorder %s548_s20, %s544_s18 }
  0x48   : > { %p546_p0 = pnand %p545_p13, %p698_p9 }
  0x49   : > { %p551_p4 = por %p550_p3, %p549_p1 }
  0x4a   : > { %p547_p2 = pneg %p546_p0 }
  0x4c   : > { %p552_p5 = pnand %p551_p4, %p547_p2 }
  0x4e   : > { %555 = shalt.err (!%p552_p5)
}
  0x4f   : > { %s624_s21 = smov 128   ;;  %s625_s22 = smov 8  }
  0x50   : > { %448 = dma.vmem_to_hbm [thread:$0]  (%p698_p9), %s766_s28, 256, %s764_s4, %s277_s5, %s624_s21, %s624_s21, %s625_s22  }
  0x51 PF: > { %p460_p6 = scmp.ge.s32.totalorder %s614_s14, 2  ;;  %s305_s27 = sand.u32 1, %s594_s9  }
  0x52   : > { %s306_s29 = scalar_lea.sflag [#allocation4], %s305_s27 }
  0x53   : > { %p455_p7 = pnand %p460_p6, %p705_p11 }
  0x55   : > { %p456_p8 = pneg %p455_p7 }
  0x57   : > { %589 = dma.done.wait (%p456_p8), %s306_s29, 256  }
  0x58   : > { %591 = vsyncadd (%p456_p8), %s306_s29, 4294967040  ;;  %s19_s14 = sadd.s32 1, %s614_s14   ;;  %s822_s9 = smov %s598_s10 }
  0x59   : > { %p16_p10 = scmp.ge.s32.totalorder %s19_s14, 6   ;;  %s823_s10 = smov %s602_s11 }
  0x5a   : > { %s824_s11 = smov %s703_s24  ;;  %s825_s12 = smov %s610_s13 }
  0x5b   : > { %s826_s13 = smov %s828_s17  ;;  %18 = sbr.rel (!%p16_p10) target bundleno = 7 (0x7), region = 90 }
  0x60   :  { %311 = vsyncpa [#allocation3], 1 }
  0x61   :  { %313 = vsyncpa [#allocation3 + $0x1], 1 }
  0x62   :  { %314 = vsyncpa [#allocation4], 1 }
  0x63   :  { %316 = vsyncpa [#allocation4 + $0x1], 1 }
  0x64   :  { %317 = vsyncpa [#allocation5], 1 }
  0x65   :  { %319 = vsyncpa [#allocation5 + $0x1], 1 }

</bundles_post_ra>
